<compile_context>
chip_gen: v7x
topology: tpu7x:2x2x1
jax: 0.10.0
libtpu: 0.0.40
codegen_flags: <defaults>
</compile_context>

<pallas_src>
import functools
import math

import jax
import jax.numpy as jnp
from jax.experimental import pallas as pl
from jax.experimental.pallas import tpu as pltpu

_NEG_BIG = -3.0e38  # finite stand-in for -inf: exp(_NEG_BIG - x) == 0.0


def _tile_logits(xq_ref, xk_ref, wq_ref, wk_ref, h_ref, scale):
    """Logits for one edge tile, lane-dense: (num_heads, block_m) float32."""
    # Projection with batch folded into the lane (edge) axis:
    #   (qd, hidden) contracted with (qd, block_m) -> (hidden, block_m).
    q = jnp.einsum('qd,qe->de', wq_ref[...], xq_ref[...],
                   preferred_element_type=jnp.float32)
    k = jnp.einsum('kd,ke->de', wk_ref[...], xk_ref[...],
                   preferred_element_type=jnp.float32)
    prod = q * k                                          # (hidden, block_m)
    h_oh = h_ref[...].astype(jnp.float32)                 # (hidden, heads)
    # Per-head segment sum over the hidden dim as an MXU matmul.
    lgt = jnp.einsum('dh,de->he', h_oh, prod,
                     preferred_element_type=jnp.float32)  # (heads, block_m)
    return lgt * scale


def _pass1_kernel(xq_ref, xk_ref, wq_ref, wk_ref, h_ref, g_ref,
                  mx_ref, seg_ref, *, scale):
    """Accumulate the global max + per-(batch, node, head) exp segment sums."""
    @pl.when(pl.program_id(0) == 0)
    def _init():
        mx_ref[...] = jnp.full(mx_ref.shape, _NEG_BIG, jnp.float32)
        seg_ref[...] = jnp.zeros_like(seg_ref)

    lgt = _tile_logits(xq_ref, xk_ref, wq_ref, wk_ref, h_ref, scale)

    m_old = mx_ref[...]                                    # (1, 1)
    m_new = jnp.maximum(m_old, jnp.max(lgt, keepdims=True))
    e = jnp.exp(lgt - m_new)                               # (heads, block_m)
    g = g_ref[...].astype(jnp.float32)                     # (block_m, b*n)
    # Online-softmax rescale of the resident accumulator when the max grows.
    seg_ref[...] = seg_ref[...] * jnp.exp(m_old - m_new) + jnp.einsum(
        'he,es->hs', e, g, preferred_element_type=jnp.float32)
    mx_ref[...] = m_new


def _pass2_kernel(mx_ref, seg_ref, xq_ref, xk_ref, wq_ref, wk_ref, h_ref,
                  g_ref, out_ref, *, scale):
    """Recompute tile logits, gather segment sums, normalize (lane-dense)."""
    lgt = _tile_logits(xq_ref, xk_ref, wq_ref, wk_ref, h_ref, scale)
    e = jnp.exp(lgt - mx_ref[...])                         # (heads, block_m)
    g = g_ref[...].astype(jnp.float32)                     # (block_m, b*n)
    denom = jnp.einsum('hs,es->he', seg_ref[...], g,
                       preferred_element_type=jnp.float32)
    out_ref[...] = e / (denom + 1e-16)


def sparse_multihead_attention(x_q, x_k, w_q, w_k, mask, num_heads,
                               reduce_dim=1, block_m=512):
    """x_q: (b, n, query_dim), x_k: (b, n, key_dim), mask: (2, m) int.

    Returns (b, m, num_heads); rows sharing mask[1 - reduce_dim] sum to 1.
    """
    b, n, query_dim = x_q.shape
    key_dim = x_k.shape[2]
    hidden_dim = w_q.shape[1]
    m = mask.shape[1]
    assert hidden_dim % num_heads == 0
    assert block_m % 128 == 0

    # Edge-axis tiling: lanes come in units of 128; don't over-pad tiny m.
    m_round = ((m + 127) // 128) * 128
    blk = min(block_m, m_round)
    m_pad = ((m + blk - 1) // blk) * blk
    num_tiles = m_pad // blk
    cols = b * m_pad                 # batch folded into the edge/lane axis
    n_seg = b * n                    # batch-qualified segment buckets
    grid = (b * num_tiles,)
    f32 = jnp.float32

    # ---- JAX glue: gather edges before projecting; build bf16 one-hots ----
    def gather_edges(x, idx, d):
        g = jnp.take(x, idx, axis=1)                      # (b, m, d)
        g = jnp.transpose(g, (2, 0, 1))                   # (d, b, m)
        g = jnp.pad(g, ((0, 0), (0, 0), (0, m_pad - m)))
        return g.reshape(d, cols).astype(f32)             # (d, b*m_pad)

    xq_t = gather_edges(x_q, mask[0], query_dim)
    xk_t = gather_edges(x_k, mask[1], key_dim)

    head = jnp.arange(hidden_dim, dtype=jnp.int32) // (hidden_dim // num_heads)
    h_oh = jax.nn.one_hot(head, num_heads, dtype=jnp.bfloat16)  # (hidden, h)

    index = mask[1 - reduce_dim].astype(jnp.int32)        # (m,)
    sid = jnp.arange(b, dtype=jnp.int32)[:, None] * n + index[None, :]
    sid = jnp.pad(sid, ((0, 0), (0, m_pad - m)), constant_values=-1)
    # -1 (padded edges) -> all-zero one-hot row -> no segment contribution.
    g_seg = jax.nn.one_hot(sid.reshape(cols), n_seg, dtype=jnp.bfloat16)

    scale = 1.0 / math.sqrt(key_dim)

    # ---- BlockSpecs (1-D grid over edge tiles; batch folded into lanes) ----
    xq_spec = pl.BlockSpec((query_dim, blk), lambda i: (0, i))
    xk_spec = pl.BlockSpec((key_dim, blk), lambda i: (0, i))
    wq_spec = pl.BlockSpec((query_dim, hidden_dim), lambda i: (0, 0))
    wk_spec = pl.BlockSpec((key_dim, hidden_dim), lambda i: (0, 0))
    h_spec = pl.BlockSpec((hidden_dim, num_heads), lambda i: (0, 0))
    g_spec = pl.BlockSpec((blk, n_seg), lambda i: (i, 0))
    seg_spec = pl.BlockSpec((num_heads, n_seg), lambda i: (0, 0))
    mx_spec = pl.BlockSpec((1, 1), lambda i: (0, 0))
    out_spec = pl.BlockSpec((num_heads, blk), lambda i: (0, i))

    flops = 2 * cols * (query_dim * hidden_dim + key_dim * hidden_dim
                        + hidden_dim * num_heads + num_heads * n_seg)
    bytes_accessed = (4 * cols * (query_dim + key_dim + num_heads)
                      + 2 * cols * n_seg
                      + 4 * (query_dim + key_dim) * hidden_dim)
    cost = pl.CostEstimate(flops=flops, transcendentals=num_heads * cols,
                           bytes_accessed=bytes_accessed)

    # ---- pass 1: global max + exp segment sums (sequential accumulation) ---
    # TODO(synk): for very large b*n the resident seg accumulator should
    # itself be tiled (second grid axis) instead of staying VMEM-resident.
    mx, seg = pl.pallas_call(
        functools.partial(_pass1_kernel, scale=scale),
        grid=grid,
        in_specs=[xq_spec, xk_spec, wq_spec, wk_spec, h_spec, g_spec],
        out_specs=(mx_spec, seg_spec),
        out_shape=(jax.ShapeDtypeStruct((1, 1), f32),
                   jax.ShapeDtypeStruct((num_heads, n_seg), f32)),
        compiler_params=pltpu.CompilerParams(
            dimension_semantics=("arbitrary",)),
        cost_estimate=cost,
    )(xq_t, xk_t, w_q, w_k, h_oh, g_seg)

    # ---- pass 2: recompute logits per tile, normalize (parallel tiles) -----
    out = pl.pallas_call(
        functools.partial(_pass2_kernel, scale=scale),
        grid=grid,
        in_specs=[mx_spec, seg_spec, xq_spec, xk_spec, wq_spec, wk_spec,
                  h_spec, g_spec],
        out_specs=out_spec,
        out_shape=jax.ShapeDtypeStruct((num_heads, cols), f32),
        compiler_params=pltpu.CompilerParams(
            dimension_semantics=("parallel",)),
        cost_estimate=cost,
    )(mx, seg, xq_t, xk_t, w_q, w_k, h_oh, g_seg)

    # (num_heads, b*m_pad) -> (b, m, num_heads)
    out = out.reshape(num_heads, b, m_pad)[:, :, :m]
    return jnp.transpose(out, (1, 2, 0))


def _xavier_uniform(key, shape):
    fan_in, fan_out = shape
    bound = math.sqrt(6.0 / (fan_in + fan_out))
    return jax.random.uniform(key, shape, jnp.float32, -bound, bound)


def _reference(x_q, x_k, w_q, w_k, mask, num_heads, reduce_dim=1):
    """Pure-JAX reference replicating the PyTorch module exactly."""
    b, n, _ = x_q.shape
    key_dim = x_k.shape[2]
    hidden_dim = w_q.shape[1]
    m = mask.shape[1]
    q = x_q @ w_q
    k = x_k @ w_k
    src_q = q[:, mask[0], :]
    dst_k = k[:, mask[1], :]
    prod = src_q * dst_k
    a = prod.reshape(b, m, num_heads, hidden_dim // num_heads).sum(-1)
    a = a / math.sqrt(key_dim)
    a = a - a.max()
    e = jnp.exp(a)
    index = mask[1 - reduce_dim]
    nseg = int(index.max()) + 1
    seg = jnp.zeros((b, nseg, num_heads), jnp.float32).at[:, index, :].add(e)
    denom = seg[:, index, :]
    return e / (denom + 1e-16)


if __name__ == "__main__":
    # Small, deterministic configuration.
    b, n = 2, 16
    query_dim, key_dim = 8, 8
    hidden_dim, num_heads = 32, 4
    m = 24

    root = jax.random.PRNGKey(0)
    k_wq, k_wk, k_xq, k_xk, k_m0, k_m1 = jax.random.split(root, 6)

    w_q = _xavier_uniform(k_wq, (query_dim, hidden_dim))
    w_k = _xavier_uniform(k_wk, (key_dim, hidden_dim))

    x_q = jax.random.normal(k_xq, (b, n, query_dim), jnp.float32)
    x_k = jax.random.normal(k_xk, (b, n, key_dim), jnp.float32)

    # (2, m) int sparse mask (edge list); int32 used in place of torch int64.
    mask = jnp.stack([
        jax.random.randint(k_m0, (m,), 0, n, dtype=jnp.int32),
        jax.random.randint(k_m1, (m,), 0, n, dtype=jnp.int32),
    ], axis=0)

    out = sparse_multihead_attention(x_q, x_k, w_q, w_k, mask, num_heads)
    out = jax.block_until_ready(out)

    ref = _reference(x_q, x_k, w_q, w_k, mask, num_heads)
    assert out.shape == (b, m, num_heads)
    max_err = float(jnp.max(jnp.abs(out - ref)))
    assert jnp.allclose(out, ref, atol=1e-5, rtol=1e-5), max_err

    print("KERNEL_OK")
</pallas_src>

<mosaic_0001>
module attributes {stable_mosaic.version = 11 : i64} {
  func.func @_pass1_kernel(%arg0: i32, %arg1: memref<8x128xf32, #tpu.memory_space<vmem>>, %arg2: memref<8x128xf32, #tpu.memory_space<vmem>>, %arg3: memref<8x32xf32, #tpu.memory_space<vmem>>, %arg4: memref<8x32xf32, #tpu.memory_space<vmem>>, %arg5: memref<32x4xbf16, #tpu.memory_space<vmem>>, %arg6: memref<128x32xbf16, #tpu.memory_space<vmem>>, %arg7: memref<1x1xf32, #tpu.memory_space<vmem>>, %arg8: memref<4x32xf32, #tpu.memory_space<vmem>>) attributes {dimension_semantics = [#tpu.dimension_semantics<arbitrary>], iteration_bounds = array<i64: 2>, scalar_prefetch = 0 : i64, scratch_operands = 0 : i64, tpu.core_type = #tpu.core_type<tc>, window_params = [{transform_indices = @transform_0, window_bounds = array<i64: 8, 128>}, {transform_indices = @transform_1, window_bounds = array<i64: 8, 128>}, {pipeline_mode = #tpu.pipeline_mode<synchronous>, transform_indices = @transform_2, window_bounds = array<i64: 8, 32>}, {pipeline_mode = #tpu.pipeline_mode<synchronous>, transform_indices = @transform_3, window_bounds = array<i64: 8, 32>}, {pipeline_mode = #tpu.pipeline_mode<synchronous>, transform_indices = @transform_4, window_bounds = array<i64: 32, 4>}, {transform_indices = @transform_5, window_bounds = array<i64: 128, 32>}, {pipeline_mode = #tpu.pipeline_mode<synchronous>, transform_indices = @transform_6, window_bounds = array<i64: 1, 1>}, {pipeline_mode = #tpu.pipeline_mode<synchronous>, transform_indices = @transform_7, window_bounds = array<i64: 4, 32>}]} {
    %c0_i32 = arith.constant 0 : i32
    %0 = arith.cmpi eq, %arg0, %c0_i32 : i32
    %1 = arith.extui %0 : i1 to i32
    %c0_i32_0 = arith.constant 0 : i32
    %2 = arith.cmpi ne, %1, %c0_i32_0 : i32
    scf.if %2 {
      %cst_25 = arith.constant -3.000000e+38 : f32
      %36 = vector.broadcast %cst_25 : f32 to vector<1x1xf32>
      %c0_26 = arith.constant 0 : index
      %c0_27 = arith.constant 0 : index
      %37 = vector.load %arg7[%c0_26, %c0_27] : memref<1x1xf32, #tpu.memory_space<vmem>>, vector<1x1xf32>
      tpu.vector_store %arg7[%c0_26, %c0_27], %36 {strides = array<i32>} : memref<1x1xf32, #tpu.memory_space<vmem>>, vector<1x1xf32>,
      %cst_28 = arith.constant 0.000000e+00 : f32
      %38 = vector.broadcast %cst_28 : f32 to vector<4x32xf32>
      %c0_29 = arith.constant 0 : index
      %c0_30 = arith.constant 0 : index
      %39 = vector.load %arg8[%c0_29, %c0_30] : memref<4x32xf32, #tpu.memory_space<vmem>>, vector<4x32xf32>
      tpu.vector_store %arg8[%c0_29, %c0_30], %38 {strides = array<i32>} : memref<4x32xf32, #tpu.memory_space<vmem>>, vector<4x32xf32>,
    } else {
    }
    %c0 = arith.constant 0 : index
    %c0_1 = arith.constant 0 : index
    %3 = vector.load %arg3[%c0, %c0_1] : memref<8x32xf32, #tpu.memory_space<vmem>>, vector<8x32xf32>
    %c0_2 = arith.constant 0 : index
    %c0_3 = arith.constant 0 : index
    %4 = vector.load %arg1[%c0_2, %c0_3] : memref<8x128xf32, #tpu.memory_space<vmem>>, vector<8x128xf32>
    "tpu.trace_start"() <{level = 10 : i32, message = "qd,qe->de"}> : () -> ()
    %cst = arith.constant dense<0.000000e+00> : vector<32x128xf32>
    %5 = tpu.matmul %3, %4, %cst {dimension_numbers = #tpu.dot_dimension_numbers<[0], [0], [1], [1], [0, 1, 1, 1], [], []>} : vector<8x32xf32>, vector<8x128xf32>, vector<32x128xf32> -> vector<32x128xf32>
    "tpu.trace_stop"() : () -> ()
    %c0_4 = arith.constant 0 : index
    %c0_5 = arith.constant 0 : index
    %6 = vector.load %arg4[%c0_4, %c0_5] : memref<8x32xf32, #tpu.memory_space<vmem>>, vector<8x32xf32>
    %c0_6 = arith.constant 0 : index
    %c0_7 = arith.constant 0 : index
    %7 = vector.load %arg2[%c0_6, %c0_7] : memref<8x128xf32, #tpu.memory_space<vmem>>, vector<8x128xf32>
    "tpu.trace_start"() <{level = 10 : i32, message = "kd,ke->de"}> : () -> ()
    %cst_8 = arith.constant dense<0.000000e+00> : vector<32x128xf32>
    %8 = tpu.matmul %6, %7, %cst_8 {dimension_numbers = #tpu.dot_dimension_numbers<[0], [0], [1], [1], [0, 1, 1, 1], [], []>} : vector<8x32xf32>, vector<8x128xf32>, vector<32x128xf32> -> vector<32x128xf32>
    "tpu.trace_stop"() : () -> ()
    %9 = arith.mulf %5, %8 : vector<32x128xf32>
    %c0_9 = arith.constant 0 : index
    %c0_10 = arith.constant 0 : index
    %10 = vector.load %arg5[%c0_9, %c0_10] : memref<32x4xbf16, #tpu.memory_space<vmem>>, vector<32x4xbf16>
    %11 = arith.extf %10 : vector<32x4xbf16> to vector<32x4xf32>
    "tpu.trace_start"() <{level = 10 : i32, message = "dh,de->he"}> : () -> ()
    %cst_11 = arith.constant dense<0.000000e+00> : vector<4x128xf32>
    %12 = tpu.matmul %11, %9, %cst_11 {dimension_numbers = #tpu.dot_dimension_numbers<[0], [0], [1], [1], [0, 1, 1, 1], [], []>} : vector<32x4xf32>, vector<32x128xf32>, vector<4x128xf32> -> vector<4x128xf32>
    "tpu.trace_stop"() : () -> ()
    %cst_12 = arith.constant 0.353553385 : f32
    %13 = vector.broadcast %cst_12 : f32 to vector<4x128xf32>
    %14 = arith.mulf %12, %13 : vector<4x128xf32>
    %c0_13 = arith.constant 0 : index
    %c0_14 = arith.constant 0 : index
    %15 = vector.load %arg7[%c0_13, %c0_14] : memref<1x1xf32, #tpu.memory_space<vmem>>, vector<1x1xf32>
    %16 = vector.shape_cast %14 : vector<4x128xf32> to vector<1x4x128xf32>
    %cst_15 = arith.constant dense<0xFF800000> : vector<1xf32>
    %17 = vector.multi_reduction <maximumf>, %16, %cst_15 [1, 2] : vector<1x4x128xf32> to vector<1xf32>
    %18 = vector.shape_cast %17 : vector<1xf32> to vector<1x1x1xf32>
    %19 = vector.extract %18[0, 0, 0] : f32 from vector<1x1x1xf32>
    %20 = vector.broadcast %19 : f32 to vector<1x1xf32>
    %21 = arith.maximumf %15, %20 : vector<1x1xf32>
    %22 = vector.broadcast %21 : vector<1x1xf32> to vector<4x128xf32>
    %23 = arith.subf %14, %22 : vector<4x128xf32>
    %24 = math.exp %23 : vector<4x128xf32>
    %c0_16 = arith.constant 0 : index
    %c0_17 = arith.constant 0 : index
    %25 = vector.load %arg6[%c0_16, %c0_17] : memref<128x32xbf16, #tpu.memory_space<vmem>>, vector<128x32xbf16>
    %26 = arith.extf %25 : vector<128x32xbf16> to vector<128x32xf32>
    %c0_18 = arith.constant 0 : index
    %c0_19 = arith.constant 0 : index
    %27 = vector.load %arg8[%c0_18, %c0_19] : memref<4x32xf32, #tpu.memory_space<vmem>>, vector<4x32xf32>
    %28 = arith.subf %15, %21 : vector<1x1xf32>
    %29 = math.exp %28 : vector<1x1xf32>
    %30 = vector.broadcast %29 : vector<1x1xf32> to vector<4x32xf32>
    %31 = arith.mulf %27, %30 : vector<4x32xf32>
    "tpu.trace_start"() <{level = 10 : i32, message = "he,es->hs"}> : () -> ()
    %cst_20 = arith.constant dense<0.000000e+00> : vector<4x32xf32>
    %32 = tpu.matmul %24, %26, %cst_20 {dimension_numbers = #tpu.dot_dimension_numbers<[1], [0], [0], [1], [0, 0, 1, 1], [], []>} : vector<4x128xf32>, vector<128x32xf32>, vector<4x32xf32> -> vector<4x32xf32>
    "tpu.trace_stop"() : () -> ()
    %33 = arith.addf %31, %32 : vector<4x32xf32>
    %c0_21 = arith.constant 0 : index
    %c0_22 = arith.constant 0 : index
    %34 = vector.load %arg8[%c0_21, %c0_22] : memref<4x32xf32, #tpu.memory_space<vmem>>, vector<4x32xf32>
    tpu.vector_store %arg8[%c0_21, %c0_22], %33 {strides = array<i32>} : memref<4x32xf32, #tpu.memory_space<vmem>>, vector<4x32xf32>,
    %c0_23 = arith.constant 0 : index
    %c0_24 = arith.constant 0 : index
    %35 = vector.load %arg7[%c0_23, %c0_24] : memref<1x1xf32, #tpu.memory_space<vmem>>, vector<1x1xf32>
    tpu.vector_store %arg7[%c0_23, %c0_24], %21 {strides = array<i32>} : memref<1x1xf32, #tpu.memory_space<vmem>>, vector<1x1xf32>,
    return
  }
  func.func @transform_0(%arg0: i32) -> (i32, i32) {
    %c0_i32 = arith.constant 0 : i32
    %c0_i32_0 = arith.constant 0 : i32
    return %c0_i32, %arg0 : i32, i32
  }
  func.func @transform_1(%arg0: i32) -> (i32, i32) {
    %c0_i32 = arith.constant 0 : i32
    %c0_i32_0 = arith.constant 0 : i32
    return %c0_i32, %arg0 : i32, i32
  }
  func.func @transform_2(%arg0: i32) -> (i32, i32) {
    %c0_i32 = arith.constant 0 : i32
    %c0_i32_0 = arith.constant 0 : i32
    %c0_i32_1 = arith.constant 0 : i32
    return %c0_i32, %c0_i32_0 : i32, i32
  }
  func.func @transform_3(%arg0: i32) -> (i32, i32) {
    %c0_i32 = arith.constant 0 : i32
    %c0_i32_0 = arith.constant 0 : i32
    %c0_i32_1 = arith.constant 0 : i32
    return %c0_i32, %c0_i32_0 : i32, i32
  }
  func.func @transform_4(%arg0: i32) -> (i32, i32) {
    %c0_i32 = arith.constant 0 : i32
    %c0_i32_0 = arith.constant 0 : i32
    %c0_i32_1 = arith.constant 0 : i32
    return %c0_i32, %c0_i32_0 : i32, i32
  }
  func.func @transform_5(%arg0: i32) -> (i32, i32) {
    %c0_i32 = arith.constant 0 : i32
    %c0_i32_0 = arith.constant 0 : i32
    return %arg0, %c0_i32 : i32, i32
  }
  func.func @transform_6(%arg0: i32) -> (i32, i32) {
    %c0_i32 = arith.constant 0 : i32
    %c0_i32_0 = arith.constant 0 : i32
    %c0_i32_1 = arith.constant 0 : i32
    return %c0_i32, %c0_i32_0 : i32, i32
  }
  func.func @transform_7(%arg0: i32) -> (i32, i32) {
    %c0_i32 = arith.constant 0 : i32
    %c0_i32_0 = arith.constant 0 : i32
    %c0_i32_1 = arith.constant 0 : i32
    return %c0_i32, %c0_i32_0 : i32, i32
  }
}

</mosaic_0001>

<bundles_post_ra>
// kernel: tpu_custom_call.1
= control target key start
LH: loop header
LB: loop body
LE: loop exit
PB: predicated region body
PF: predicated region fallthrough
CT: control target
= control target key end

     0   :  { %13 = vsyncpa [#allocation3], 0  ;;  %s1388_s0 = inlined_call_operand.vmem [shape: f32[8,256], index: 0, kind: input, shape index: {}]   ;;  %s1389_s1 = inlined_call_operand.vmem [shape: f32[8,256], index: 1, kind: input, shape index: {}]   ;;  %s1390_s2 = inlined_call_operand.vmem [shape: f32[8,32], index: 2, kind: input, shape index: {}]   ;;  %s1391_s3 = inlined_call_operand.vmem [shape: f32[8,32], index: 3, kind: input, shape index: {}]   ;;  %s1392_s4 = inlined_call_operand.vmem [shape: bf16[32,4], index: 4, kind: input, shape index: {}]   ;;  %s1393_s5 = inlined_call_operand.vmem [shape: bf16[256,32], index: 5, kind: input, shape index: {}]   ;;  %s1394_s6 = inlined_call_operand.hbm [shape: f32[1,1], index: 6, kind: output, shape index: {0}]   ;;  %s1395_s7 = inlined_call_operand.hbm [shape: f32[4,32], index: 7, kind: output, shape index: {1}]  }
   0x1   :  { %14 = vsyncpa [#allocation5], 0  ;;  %s1277_s24 = smov 0  }
   0x2 LB: > { %s1283_s25 = sadd.s32 4294967295, %s1227_s24   ;;  %p932_p0 = scmp.ge.s32.totalorder %s1227_s24, 1  ;;  %s1227_s24 = sphi %s1277_s24, %s20_s24  }
   0x3   : > { %p251_p1 = scmp.lt.s32.totalorder %s1227_s24, 3 }
   0x5   : > { %p252_p2 = pnand %p932_p0, %p251_p1 }
   0x6   : > { %p286_p3 = scmp.lt.s32.totalorder (!%p252_p2), %s1283_s25, 1  ;;  %s935_s26 = sshll.u32 (!%p252_p2), %s1283_s25, 4 }
   0x7   : > { %255 = sbr.rel (%p252_p2) target bundleno = 1198 (0x4ae), region = 44  ;;  %p295_p4 = scmp.lt.s32.totalorder (!%p252_p2), %s935_s26, 31 }
   0x8   : > { %p937_p5 = scmp.ne.s32.totalorder (!%p252_p2), %s1283_s25, 0 }
   0xe   : > { %s287_s27 = scalar_select %p286_p3, %s1283_s25, 1 }
   0xf   : > { %s1397_s26 = smov (!%p295_p4, %s935_s26), 31  ;;  %303 = sbr.rel (%p937_p5) target bundleno = 22 (0x16), region = 48 }
  0x10   : > { %s933_s28 = sshll.u32 %s287_s27, 3  ;;  %s936_s12 = sshll.u32 %s1397_s26, 2  ;;  %vm304_vm0 = vcmask (!%p937_p5), 0   ;;  %vm306_vm1 = vcmask (!%p937_p5), 257024   ;;  %v1229_v0 = vmov (!%p937_p5), -3e+38  }
  0x11   : > { %s289_s8 = scalar_lea.vmem %s1388_s0, %s933_s28  ;;  %s293_s11 = scalar_lea.vmem %s1389_s1, %s933_s28  ;;  %305 = vst.msk [vmem:[#allocation2] sm:$0x1] (!%p937_p5), %vm304_vm0, %v1229_v0  ;;  %v1230_v1 = vmov (!%p937_p5), 0.0  }
  0x12   : > { %s1299_s15 = scalar_lea.vmem %s1393_s5, %s936_s12  ;;  %307 = vst.msk [vmem:[#allocation4] sm:$0xf] (!%p937_p5), %vm306_vm1, %v1230_v1 }
  0x16 PF: > { %v308_v2 = vld [vmem:[%s1390_s2] sm:$0xff]  ;;  %v993_v9 = vld [vmem:[%s1392_s4 + $0x8] sm:$0xff]   ;;  %vm342_vm2 = vcmask 64512   ;;  %v1231_v20 = vmov 0.0|0.0   ;;  %vm1232_vm3 = vmmov 0   ;;  %v1233_v21 = vmov 0.0  }
  0x17   : > { %310 = vxpose.xlu0.b32.start.end [1/1] (short) (narrow) %v308_v2, 32  ;;  %v309_v3 = vld [vmem:[%s289_s8] sm:$0xff]  ;;  %v959_v10 = vunpack.c.l.bf16 %v993_v9  ;;  %v960_v11 = vunpack.c.h.bf16 %v993_v9  ;;  %1101 = vmatprep.subr.bf16.mxu1 %v1231_v20  ;;  %vm615_vm4 = vcmask 261120   ;;  %vm691_vm5 = vcmask 1043456   ;;  %v994_v43 = vld [vmem:[%s1299_s15 + $0x8] sm:$0xff]   ;;  %v995_v44 = vld [vmem:[%s1299_s15 + $0x10] sm:$0xff]  }
  0x18   : > { %1033 = vmatprep.subr.mxu0 %v309_v3  ;;  %v440_v4 = vld [vmem:[%s1391_s3] sm:$0xff]  ;;  %1092 = vmatprep.mubr.msk.f32.mxu1 %vm1232_vm3, %v1233_v21  ;;  %v1234_v41 = vmov 0   ;;  %v996_v45 = vld [vmem:[%s1299_s15 + $0x18] sm:$0xff]   ;;  %v705_v53 = vlaneseq  ;;  %vm835_vm6 = vcmask 0   ;;  %v998_v63 = vld [vmem:[%s1299_s15 + $0x28] sm:$0xff]   ;;  %p1135_p6 = scmp.eq.s32.totalorder %s1283_s25, 1 }
  0x19   : > { %1034 = vmatpush3.msra.mxu0 %v309_v3  ;;  %v441_v5 = vld [vmem:[%s293_s11] sm:$0xff]  ;;  %v999_v0 = vld [vmem:[%s1299_s15 + $0x30] sm:$0xff]   ;;  %v1000_v1 = vld [vmem:[%s1299_s15 + $0x38] sm:$0xff]   ;;  %s1235_s27 = smov [#allocation2]  }
  0x1a   : > { %1041 = vmatprep.subr.mxu0 %v441_v5  ;;  %v954_v6 = vld [vmem:[%s1392_s4] sm:$0xff]   ;;  %v706_v54 = vshrl.u32 %v705_v53, 7  ;;  %s844_s28 = sshll.u32 %s1235_s27, 4  ;;  %s845_s28 = int_to_ptr.vmem [resolvable:$true] %s844_s28 }
  0x1b   : > { %v955_v7 = vunpack.c.l.bf16 %v954_v6  ;;  %v956_v8 = vunpack.c.h.bf16 %v954_v6  ;;  %v962_v42 = vld [vmem:[%s1299_s15] sm:$0xff]   ;;  %s1161_s29 = scalar_lea.vmem %s845_s28, 16  ;;  %s1167_s30 = scalar_lea.vmem %s845_s28, 32 }
  0x1c   : > { %1103 = vmatpush3.bf16.msra.mxu1 %v962_v42  ;;  %v690_v55 = vld [vmem:[#allocation2] sm:$0x1]  ;;  %v707_v56 = vsub.s32 0, %v706_v54  ;;  %p1162_p7 = scmp.ne.s32.totalorder %s845_s28, %s1161_s29  ;;  %p1168_p10 = scmp.lt.s32.totalorder %s845_s28, %s845_s28 }
  0x1d   : > { %583 = vxpose.xlu1.b32.start [1/4] (short) (narrow) %v955_v7, 8  ;;  %1104 = vmatprep.subr.bf16.mxu1 %v1231_v20  ;;  %v997_v61 = vld [vmem:[%s1299_s15 + $0x20] sm:$0xff]   ;;  %p1169_p11 = scmp.lt.s32.totalorder %s1167_s30, %s1161_s29 }
  0x1e   : > { %p1163_p8 = pnand %p1162_p7, %p1135_p6 }
  0x1f   : > { %p1170_p12 = por %p1169_p11, %p1168_p10 }
  0x20   : > { %1106 = vmatpush3.bf16.msra.mxu1 %v994_v43  ;;  %p1164_p9 = pneg %p1163_p8 }
  0x21   : > { %584 = vxpose.xlu1.b32.cont [2/4] (short) (narrow) %v956_v8, 8  ;;  %1107 = vmatprep.subr.bf16.mxu1 %v1231_v20 }
  0x22   : > { %p1171_p13 = pnand %p1170_p12, %p1164_p9 }
  0x24   : > { %442 = vxpose.xlu0.b32.start.end [1/1] (short) (narrow) %v440_v4, 32  ;;  %1109 = vmatpush3.bf16.msra.mxu1 %v995_v44 }
  0x25   : > { %585 = vxpose.xlu1.b32.cont [3/4] (short) (narrow) %v959_v10, 8  ;;  %1110 = vmatprep.subr.bf16.mxu1 %v1231_v20 }
  0x28   : > { %1112 = vmatpush3.bf16.msra.mxu1 %v996_v45 }
  0x29   : > { %586 = vxpose.xlu1.b32.end [4/4] (short) (narrow) %v960_v11, 8  ;;  %1113 = vmatprep.subr.bf16.mxu1 %v1231_v20 }
  0x2c   : > { %1115 = vmatpush3.bf16.msra.mxu1 %v997_v61 }
  0x2d   : > { %1116 = vmatprep.subr.bf16.mxu1 %v1231_v20 }
  0x30   : > { %1118 = vmatpush3.bf16.msra.mxu1 %v998_v63 }
  0x31   : > { %1119 = vmatprep.subr.bf16.mxu1 %v1231_v20 }
  0x34   : > { %1121 = vmatpush3.bf16.msra.mxu1 %v999_v0 }
  0x35   : > { %1122 = vmatprep.subr.bf16.mxu1 %v1231_v20 }
  0x38   : > { %1124 = vmatpush3.bf16.msra.mxu1 %v1000_v1 }
  0x47   : > { %1156 = vset.pattern.permute.xlu1 %v1234_v41 }
  0x4d   : > { %1155 = vset.pattern.permute.xlu0 %v1234_v41 }
  0x97   : > { %v326_v12 = vpop.trf.xlu0 }
  0x98   : > { %1035 = vmatprep.mubr.msk.f32.mxu0 %vm342_vm2, %v326_v12 }
  0x9b   : > { %v327_v13 = vpop.trf.xlu0 }
  0x9c   : > { %1036 = vmatmul.mubr.msk.f32.vlgmr.msra.gmra.mrb[0].mxu0 %vm342_vm2, %v327_v13 }
  0x9d   : > { %1042 = vmatpush3.msra.mxu0 %v441_v5  ;;  %v599_v36 = vpop.trf.xlu1 }
  0x9e   : > { %1095 = vmatprep.subr.bf16.mxu0 %v1231_v20 }
  0x9f   : > { %v328_v14 = vpop.trf.xlu0 }
  0xa0   : > { %1038 = vmatprep.mubr.msk.f32.mxu0 %vm342_vm2, %v328_v14 }
  0xa3   : > { %v329_v15 = vpop.trf.xlu0 }
  0xa4   : > { %1039 = vmatmul.mubr.msk.f32.gmra.mrb[2].mxu0 %vm342_vm2, %v329_v15 }
  0xa7   : > { %v458_v16 = vpop.trf.xlu0 }
  0xa8   : > { %1043 = vmatprep.mubr.msk.f32.mxu0 %vm342_vm2, %v458_v16 }
  0xab   : > { %v459_v17 = vpop.trf.xlu0 }
  0xac   : > { %1044 = vmatmul.mubr.msk.f32.vlgmr.msra.gmra.mrb[4].mxu0 %vm342_vm2, %v459_v17 }
  0xaf   : > { %v460_v18 = vpop.trf.xlu0 }
  0xb0   : > { %1046 = vmatprep.mubr.msk.f32.mxu0 %vm342_vm2, %v460_v18 }
  0xb3   : > { %v461_v19 = vpop.trf.xlu0 }
  0xb4   : > { %1047 = vmatmul.mubr.msk.f32.gmra.mrb[6].mxu0 %vm342_vm2, %v461_v19 }
  0xb5   : > { %1057 = vmatprep.mubr.msk.f32.mxu0 %vm1232_vm3, %v1233_v21 }
 0x16f   : > { %v1037_v22 = vpop.f32.mrb[0].mxu0 }
 0x170   : > { %v421_v23 = vpop.f32.mrb[1].mxu0 }
 0x177   : > { %v1040_v24 = vpop.f32.mrb[2].mxu0 }
 0x178   : > { %v431_v25 = vpop.f32.mrb[3].mxu0 }
 0x17f   : > { %v1045_v26 = vpop.f32.mrb[4].mxu0 }
 0x180   : > { %v572_v27 = vmul.f32 %v1045_v26, %v1037_v22  ;;  %v552_v28 = vpop.f32.mrb[5].mxu0 }
 0x181   : > { %v571_v29 = vmul.f32 %v552_v28, %v421_v23 }
 0x183   : > { %v1096_v30 = vpack.c.bf16 %v572_v27, %v571_v29 }
 0x185   : > { %1097 = vmatpush3.bf16.msra.mxu0 %v1096_v30 }
 0x186   : > { %1098 = vmatprep.subr.bf16.mxu0 %v1231_v20 }
 0x187   : > { %v1048_v31 = vpop.f32.mrb[6].mxu0 }
 0x188   : > { %v574_v32 = vmul.f32 %v1048_v31, %v1040_v24  ;;  %v562_v33 = vpop.f32.mrb[7].mxu0 }
 0x189   : > { %v573_v34 = vmul.f32 %v562_v33, %v431_v25 }
 0x18b   : > { %v1099_v35 = vpack.c.bf16 %v574_v32, %v573_v34 }
 0x18d   : > { %1100 = vmatpush3.bf16.msra.mxu0 %v1099_v35 }
 0x190   : > { %1058 = vmatmul.mubr.msk.f32.vlgmr.msra.gmra.mrb[8].mxu0 %vm615_vm4, %v599_v36 }
 0x263   : > { %v685_v37 = vpop.f32.mrb[8].mxu0 }
 0x264   : > { %v689_v38 = vmul.f32 0.35355338, %v685_v37  ;;  %v1059_v39 = vpop.f32.mrb[9].mxu0 }
 0x266   : > { %v692_v40 = vsel %vm691_vm5, %v689_v38, -inf }
 0x267   : > { %693 = vmax.xlane.f32.xlu1 %v692_v40 }
 0x2f4   : > { %v694_v46 = vpop.xlane.xlu1 %693 }
 0x2f5   : > { %v695_v47 = vrot.slane %v694_v46, 4 }
 0x2f7   : > { %v696_v48 = vmax.f32 %v694_v46, %v695_v47 }
 0x2f9   : > { %v697_v49 = vrot.slane %v696_v48, 2 }
 0x2fb   : > { %v698_v50 = vmax.f32 %v696_v48, %v697_v49 }
 0x2fd   : > { %v699_v51 = vrot.slane %v698_v50, 1 }
 0x2ff   : > { %v700_v52 = vmax.f32 %v698_v50, %v699_v51 }
 0x301   : > { %1125 = vpush %v700_v52 }
 0x332   : > { %s1126_s26 = spop %1125 }
 0x333   : > { %v702_v57 = vstv %s1126_s26 }
 0x334   : > { %v703_v58 = vmax.f32 %v690_v55, %v702_v57 }
 0x336   : > { %v749_v59 = vsub.f32 %v690_v55, %v703_v58  ;;  %v708_v60 = vrot.slane %v703_v58, %v707_v56  ;;  %836 = vst.msk [vmem:[#allocation2] sm:$0x1] %vm835_vm6, %v703_v58 }
 0x338   : > { %v750_v62 = vmul.f32 1.442695, %v749_v59  ;;  %710 = vperm.xlu0 %1155, %v708_v60  }
 0x33a   : > { %1157 = vpow2.f32 %v750_v62 }
 0x344   : > { %v1158_v2 = vpop.eup %1157 }
 0x345   : > { %v756_v3 = vrot.slane %v1158_v2, %v707_v56 }
 0x347   : > { %758 = vperm.xlu1 %1156, %v756_v3  }
 0x3b7   : > { %v711_v4 = vpop.permute.xlu0 %710 }
 0x3b8   : > { %v713_v5 = vsub.f32 %v689_v38, %v711_v4 }
 0x3ba   : > { %v714_v6 = vmul.f32 1.442695, %v713_v5 }
 0x3bc   : > { %1159 = vpow2.f32 %v714_v6 }
 0x3c6   : > { %v1160_v7 = vpop.eup %1159 }
 0x3c7   : > { %1093 = vmatmul.mubr.f32.vlgmr.msra.gmra.mrb[0].mxu1 %v1160_v7 }
 0x3c8   : > { %1174 = shalt.err (!%p1171_p13)
}
 0x3c9   : > { %s1175_s10 = scalar_lea.hbm %s1394_s6, 16 }
 0x3ca   : > { %p1176_p0 = scmp.ne.s32.totalorder %s1394_s6, %s1175_s10  ;;  %p1181_p3 = scmp.lt.u32.totalorder %s1175_s10, %s1394_s6 }
 0x3cc   : > { %p1177_p1 = pnand %p1176_p0, %p1135_p6 }
 0x3ce   : > { %p1178_p2 = pneg %p1177_p1 }
 0x3d0   : > { %p1183_p4 = pnand %p1181_p3, %p1178_p2 }
 0x3d2   : > { %1186 = shalt.err (!%p1183_p4)
}
 0x3d3   : > { %1128 = dma.vmem_to_hbm [thread:$0]  (%p1135_p6), %s845_s28, 16, %s1394_s6, [#allocation3]   ;;  %v748_v8 = vld [vmem:[#allocation4] sm:$0xf]  ;;  %v759_v9 = vpop.permute.xlu1 %758  ;;  %vm833_vm7 = vcmask 257024  }
 0x3d4   : > { %s1236_s17 = smov [#allocation4]   ;;  %v761_v10 = vmul.f32 %v759_v9, %v748_v8 }
 0x3d5   : > { %s855_s18 = sshll.u32 %s1236_s17, 4  ;;  %s856_s18 = int_to_ptr.vmem [resolvable:$true] %s855_s18 }
 0x3d6   : > { %s1187_s19 = scalar_lea.vmem %s856_s18, 64  ;;  %p1194_p9 = scmp.lt.s32.totalorder %s856_s18, %s856_s18 }
 0x3d7   : > { %p1188_p5 = scmp.ne.s32.totalorder %s856_s18, %s1187_s19  ;;  %p1195_p10 = scmp.lt.s32.totalorder %s1187_s19, %s1187_s19 }
 0x3d9   : > { %p1189_p7 = pnand %p1188_p5, %p1135_p6  ;;  %p1196_p11 = por %p1195_p10, %p1194_p9 }
 0x3db   : > { %p1190_p8 = pneg %p1189_p7 }
 0x3dd   : > { %p1197_p12 = pnand %p1196_p11, %p1190_p8 }
 0x49a   : > { %v828_v11 = vpop.f32.mrb[0].mxu1 }
 0x49b   : > { %v832_v12 = vadd.f32 %v828_v11, %v761_v10  ;;  %v1094_v13 = vpop.f32.mrb[1].mxu1 }
 0x49d   : > { %834 = vst.msk [vmem:[#allocation4] sm:$0xf] %vm833_vm7, %v832_v12 }
 0x49e   : > { %1200 = shalt.err (!%p1197_p12)
}
 0x49f   : > { %s1201_s22 = scalar_lea.hbm %s1395_s7, 64 }
 0x4a0   : > { %p1202_p13 = scmp.ne.s32.totalorder %s1395_s7, %s1201_s22  ;;  %p1207_p2 = scmp.lt.u32.totalorder %s1201_s22, %s1395_s7 }
 0x4a2   : > { %p1203_p0 = pnand %p1202_p13, %p1135_p6 }
 0x4a4   : > { %p1204_p1 = pneg %p1203_p0 }
 0x4a6   : > { %p1209_p3 = pnand %p1207_p2, %p1204_p1 }
 0x4a8   : > { %1212 = shalt.err (!%p1209_p3)
}
 0x4a9   : > { %1130 = dma.vmem_to_hbm [thread:$0]  (%p1135_p6), %s856_s18, 64, %s1395_s7, [#allocation5]  }
 0x4aa   : > { %1218 = dma.done.wait (%p1135_p6), [#allocation3], 16  }
 0x4ab   : > { %1220 = vsyncadd (%p1135_p6), [#allocation3], 4294967280 }
 0x4ac   : > { %1222 = dma.done.wait (%p1135_p6), [#allocation5], 64  }
 0x4ad   : > { %1224 = vsyncadd (%p1135_p6), [#allocation5], 4294967232 }
 0x4ae PF: > { %s20_s24 = sadd.s32 1, %s1227_s24  }
 0x4af   : > { %p17_p4 = scmp.ge.s32.totalorder %s20_s24, 4  }
 0x4b1   :  { %19 = sbr.rel (!%p17_p4) target bundleno = 2 (0x2), region = 89 }
 0x4b8   :  { %872 = vsyncpa [#allocation3], 1 }
 0x4b9   :  { %874 = vsyncpa [#allocation3 + $0x1], 1 }
 0x4ba   :  { %875 = vsyncpa [#allocation5], 1 }

</bundles_post_ra>
